<compile_context>
chip_gen: v7x
topology: tpu7x:2x2x1
jax: 0.10.0
libtpu: 0.0.40
codegen_flags: <defaults>
</compile_context>

<pallas_src>
import jax
import jax.numpy as jnp
from jax.experimental import pallas as pl
from jax.experimental.pallas import tpu as pltpu


_LANE = 128                      # lane-dense output width (D=32 padded up; sliced outside)
_SQRT_2_OVER_PI = 0.7978845608028654


def _gelu(x):
    # TODO(synk): PyTorch nn.GELU defaults to the exact erf form; the tanh
    # approximation is used here (kernel AND reference identically) because erf
    # has no guaranteed Mosaic lowering — deviation vs erf-GELU is ~1e-3.
    return 0.5 * x * (1.0 + jnp.tanh(_SQRT_2_OVER_PI * (x + 0.044715 * x * x * x)))


# ----------------------------------------------------------------------------
# Kernel 1: TeamsComparissonModel (embedding -> KQV self-attention -> sum/2)
# ----------------------------------------------------------------------------
def teams_attention_kernel(tok_ref, tqkv_ref, bqkv_ref, o_ref):
    """Whole flattened batch in one grid step.

    tok_ref  : (rows, 2)    int32 token ids (rows = 8-aligned padded batch)
    tqkv_ref : (V, 3*128)   precomputed emb_table @ [Wq|Wk|Wv], lane-aligned:
                            Q cols 0:128, K cols 128:256, V cols 256:384
                            (each zero-padded from D to 128 lanes)
    bqkv_ref : (1, 3*128)   matching zero-padded biases
    o_ref    : (rows, 128)  lane-dense output; only the first D lanes meaningful
    """
    rows = tok_ref.shape[0]
    V = tqkv_ref.shape[0]
    L = o_ref.shape[1]

    ids = tok_ref[...]                                      # (rows, 2) int32

    # One-hot gather fused with the QKV projection: a SINGLE MXU push replaces
    # the embedding lookup + three Linears (onehot @ (table @ W) == gather @ W).
    iota_v = jax.lax.broadcasted_iota(jnp.int32, (rows, V), 1)
    oh_a = (ids[:, 0:1] == iota_v).astype(jnp.float32)      # team_a one-hots
    oh_b = (ids[:, 1:2] == iota_v).astype(jnp.float32)      # team_b one-hots
    onehot = jnp.concatenate([oh_a, oh_b], axis=0)          # (2*rows, V)
    qkv = jnp.dot(onehot, tqkv_ref[...],
                  preferred_element_type=jnp.float32) + bqkv_ref[...]   # (2*rows, 3*128)

    # Lane-aligned slices (offsets 0/128/256) — no cross-lane extraction.
    qa, ka, va = qkv[:rows, 0:L], qkv[:rows, L:2 * L], qkv[:rows, 2 * L:3 * L]
    qb, kb, vb = qkv[rows:, 0:L], qkv[rows:, L:2 * L], qkv[rows:, 2 * L:3 * L]

    # 2-token attention: contract last dims directly (no k.T, no batched MXU
    # loop).  Stack the four score streams along sublanes so the XLU reduce and
    # the EUP exp are each issued ONCE.
    prods = jnp.concatenate([qa * ka, qa * kb, qb * ka, qb * kb], axis=0)  # (4*rows, L)
    s = jnp.sum(prods, axis=-1, keepdims=True)                             # (4*rows, 1)
    s_aa, s_ab = s[:rows], s[rows:2 * rows]
    s_ba, s_bb = s[2 * rows:3 * rows], s[3 * rows:]
    m_a = jnp.maximum(s_aa, s_ab)
    m_b = jnp.maximum(s_ba, s_bb)
    m = jnp.concatenate([m_a, m_a, m_b, m_b], axis=0)
    e = jnp.exp(s - m)                                                     # one EUP push
    e_aa, e_ab = e[:rows], e[rows:2 * rows]
    e_ba, e_bb = e[2 * rows:3 * rows], e[3 * rows:]

    # Exact softmax normalisation (approx reciprocal buys nothing here).
    d_a = e_aa + e_ab
    d_b = e_ba + e_bb
    w_aa, w_ab = e_aa / d_a, e_ab / d_a
    w_ba, w_bb = e_ba / d_b, e_bb / d_b

    # torch.sum(attn @ V, dim=-2) / 2  ==  0.5 * colsum(attn) . V
    c_a = w_aa + w_ba
    c_b = w_ab + w_bb
    # va/vb padded lanes are zero -> output padded lanes stay zero; unmasked
    # 128-wide store, no trailing pad concatenate needed.
    o_ref[...] = 0.5 * (c_a * va + c_b * vb)


def teams_attention_forward(tokens, emb_table, wq, bq, wk, bk, wv, bv):
    """tokens: (N, 2) int -> (N, D) f32.  TeamsComparissonModel forward."""
    N, S = tokens.shape
    assert S == 2, "TeamsComparissonModel attends over the two team tokens"
    V, D = emb_table.shape
    L = _LANE

    # Fuse embedding + QKV ahead of time (gather(emb) @ W == gather(emb @ W)) and
    # pad each Q/K/V column block to 128 lanes -> lane-aligned slices in-kernel.
    def pad_cols(a):
        return jnp.pad(a.astype(jnp.float32), ((0, 0), (0, L - D)))

    def pad_bias(b):
        return jnp.pad(b.astype(jnp.float32), (0, L - D))

    tqkv = jnp.concatenate(
        [pad_cols(emb_table @ wq), pad_cols(emb_table @ wk), pad_cols(emb_table @ wv)],
        axis=1)                                                            # (V, 3*128)
    bqkv = jnp.concatenate([pad_bias(bq), pad_bias(bk), pad_bias(bv)]).reshape(1, 3 * L)

    # Whole flattened batch in ONE grid step: at 10-16 rows the kernel is
    # launch/latency bound, so any grid split (incl. the v7x 2-TC split) is
    # pure per-step overhead.
    rows = max(8, ((N + 7) // 8) * 8)
    tok_p = jnp.zeros((rows, S), jnp.int32).at[:N].set(tokens.astype(jnp.int32))

    out = pl.pallas_call(
        teams_attention_kernel,
        out_shape=jax.ShapeDtypeStruct((rows, L), jnp.float32),
        grid_spec=pltpu.PrefetchScalarGridSpec(
            num_scalar_prefetch=0,
            grid=(1,),
            in_specs=[
                pl.BlockSpec((rows, S), lambda i: (0, 0)),
                pl.BlockSpec((V, 3 * L), lambda i: (0, 0)),
                pl.BlockSpec((1, 3 * L), lambda i: (0, 0)),
            ],
            out_specs=pl.BlockSpec((rows, L), lambda i: (0, 0)),
        ),
        compiler_params=pltpu.CompilerParams(dimension_semantics=("arbitrary",)),
    )(tok_p, tqkv, bqkv)
    return out[:N, :D]


# ----------------------------------------------------------------------------
# Kernel 2: fc_block1 = Linear(2D,4D) -> GELU -> Linear(4D,2D) -> GELU
# ----------------------------------------------------------------------------
def fc_block_kernel(x_ref, w1_ref, b1_ref, w2_ref, b2_ref, o_ref):
    h = _gelu(jnp.dot(x_ref[...], w1_ref[...],
                      preferred_element_type=jnp.float32) + b1_ref[...])
    o_ref[...] = _gelu(jnp.dot(h, w2_ref[...],
                               preferred_element_type=jnp.float32) + b2_ref[...])


def fc_block_forward(x, w1, b1, w2, b2):
    """x: (M, 2D) -> (M, 2D); rows padded to a sublane multiple, output lane-dense."""
    M, d_in = x.shape
    d_hid = w1.shape[1]
    L = max(_LANE, d_in)                       # lane-dense output width
    Mp = max(8, ((M + 7) // 8) * 8)            # sublane-aligned row count

    x_p = jnp.pad(x.astype(jnp.float32), ((0, Mp - M), (0, 0)))
    w2_p = jnp.pad(w2.astype(jnp.float32), ((0, 0), (0, L - d_in)))
    b2_p = jnp.pad(b2.astype(jnp.float32), (0, L - d_in)).reshape(1, L)

    out = pl.pallas_call(
        fc_block_kernel,
        out_shape=jax.ShapeDtypeStruct((Mp, L), jnp.float32),
        grid_spec=pltpu.PrefetchScalarGridSpec(
            num_scalar_prefetch=0,
            grid=(1,),
            in_specs=[
                pl.BlockSpec((Mp, d_in), lambda i: (0, 0)),
                pl.BlockSpec((d_in, d_hid), lambda i: (0, 0)),
                pl.BlockSpec((1, d_hid), lambda i: (0, 0)),
                pl.BlockSpec((d_hid, L), lambda i: (0, 0)),
                pl.BlockSpec((1, L), lambda i: (0, 0)),
            ],
            out_specs=pl.BlockSpec((Mp, L), lambda i: (0, 0)),
        ),
        compiler_params=pltpu.CompilerParams(dimension_semantics=("arbitrary",)),
    )(x_p, w1, b1.reshape(1, d_hid), w2_p, b2_p)
    return out[:M, :d_in]


# ----------------------------------------------------------------------------
# JAX glue: Conv1d and the 3-layer LSTMs.
# TODO(synk): lstm1/lstm2 (3-layer recurrences, T=5, B=2) are strictly sequential
# and latency-bound, and Conv1d(5,5,3) is trivially small, so they stay as plain
# JAX (lax.scan / einsum) rather than Pallas kernels.
# ----------------------------------------------------------------------------
def conv1d_forward(x, w, b):
    """x: (B, C_in, L), w: (C_out, C_in, K), padding = K//2 (here 1)."""
    K = w.shape[-1]
    L = x.shape[-1]
    xp = jnp.pad(x, ((0, 0), (0, 0), (K // 2, K // 2)))
    out = jnp.zeros((x.shape[0], w.shape[0], L), jnp.float32)
    for t in range(K):
        out = out + jnp.einsum("oc,bcl->bol", w[:, :, t], xp[:, :, t:t + L])
    return out + b[None, :, None]


def lstm_forward(x, layer_params, hidden):
    """PyTorch-style multi-layer LSTM (batch_first, zero init state, gate order i,f,g,o)."""
    out = x
    for (w_ih, w_hh, b_ih, b_hh) in layer_params:
        bsz = out.shape[0]

        def step(carry, x_t, w_ih=w_ih, w_hh=w_hh, b_ih=b_ih, b_hh=b_hh):
            h, c = carry
            gates = x_t @ w_ih.T + b_ih + h @ w_hh.T + b_hh
            i, f, g, o = jnp.split(gates, 4, axis=-1)
            c = jax.nn.sigmoid(f) * c + jax.nn.sigmoid(i) * jnp.tanh(g)
            h = jax.nn.sigmoid(o) * jnp.tanh(c)
            return (h, c), h

        init = (jnp.zeros((bsz, hidden), jnp.float32),
                jnp.zeros((bsz, hidden), jnp.float32))
        _, ys = jax.lax.scan(step, init, jnp.swapaxes(out, 0, 1))
        out = jnp.swapaxes(ys, 0, 1)
    return out


# ----------------------------------------------------------------------------
# Full PastAnalyser forward (Pallas path) and pure-JAX reference.
# ----------------------------------------------------------------------------
def past_analyser_forward(x, p):
    """x: (B, 5, 20) -> (B, d_model). Mirrors PastAnalyser.forward."""
    B, T, _ = x.shape
    D = p["d_model"]
    tok = x[:, :, :2].astype(jnp.int32).reshape(B * T, 2)
    x1 = teams_attention_forward(
        tok, p["emb"], p["wq"], p["bq"], p["wk"], p["bk"], p["wv"], p["bv"]
    ).reshape(B, T, D)
    x2 = conv1d_forward(x[:, :, 2:].astype(jnp.float32), p["conv_w"], p["conv_b"])
    x2 = lstm_forward(x2, p["lstm1"], D)
    h = jnp.concatenate([x1, x2], axis=-1).reshape(B * T, 2 * D)
    h = fc_block_forward(h, p["fc_w1"], p["fc_b1"], p["fc_w2"], p["fc_b2"])
    h = lstm_forward(h.reshape(B, T, 2 * D), p["lstm2"], D)
    return h[:, -1, :]


def _attention_ref(tok, emb, wq, bq, wk, bk, wv, bv):
    x = jnp.take(emb, tok, axis=0)                     # (N, 2, D)
    q = x @ wq + bq
    k = x @ wk + bk
    v = x @ wv + bv
    s = jnp.einsum("nqd,nkd->nqk", q, k)               # no 1/sqrt(D): matches the module
    w = jax.nn.softmax(s, axis=-1)
    o = jnp.einsum("nqk,nkd->nqd", w, v)
    return jnp.sum(o, axis=-2) / 2.0


def _fc_ref(x, w1, b1, w2, b2):
    return _gelu(_gelu(x @ w1 + b1) @ w2 + b2)


def reference_forward(x, p):
    B, T, _ = x.shape
    D = p["d_model"]
    tok = x[:, :, :2].astype(jnp.int32).reshape(B * T, 2)
    x1 = _attention_ref(tok, p["emb"], p["wq"], p["bq"], p["wk"], p["bk"],
                        p["wv"], p["bv"]).reshape(B, T, D)
    x2 = conv1d_forward(x[:, :, 2:].astype(jnp.float32), p["conv_w"], p["conv_b"])
    x2 = lstm_forward(x2, p["lstm1"], D)
    h = jnp.concatenate([x1, x2], axis=-1).reshape(B * T, 2 * D)
    h = _fc_ref(h, p["fc_w1"], p["fc_b1"], p["fc_w2"], p["fc_b2"])
    h = lstm_forward(h.reshape(B, T, 2 * D), p["lstm2"], D)
    return h[:, -1, :]


def _init_params(key, d_model=32, vocab=16):
    ks = iter(jax.random.split(key, 48))

    def nrm(shape, scale):
        return jax.random.normal(next(ks), shape, dtype=jnp.float32) * scale

    D = d_model
    p = {
        "d_model": D,
        "emb": nrm((vocab, D), 0.1),
        # nn.Linear(d, d) weights stored as (in, out) so the projection is x @ W + b
        "wq": nrm((D, D), 0.1), "bq": nrm((D,), 0.1),
        "wk": nrm((D, D), 0.1), "bk": nrm((D,), 0.1),
        "wv": nrm((D, D), 0.1), "bv": nrm((D,), 0.1),
        "conv_w": nrm((5, 5, 3), 0.2), "conv_b": nrm((5,), 0.1),
        "fc_w1": nrm((2 * D, 4 * D), 0.1), "fc_b1": nrm((4 * D,), 0.1),
        "fc_w2": nrm((4 * D, 2 * D), 0.1), "fc_b2": nrm((2 * D,), 0.1),
    }

    def lstm_layers(in_size, n_layers):
        layers = []
        for li in range(n_layers):
            isz = in_size if li == 0 else D
            layers.append((nrm((4 * D, isz), 0.15), nrm((4 * D, D), 0.15),
                           nrm((4 * D,), 0.1), nrm((4 * D,), 0.1)))
        return layers

    p["lstm1"] = lstm_layers(18, 3)      # nn.LSTM(18, d_model, 3)
    p["lstm2"] = lstm_layers(2 * D, 3)   # nn.LSTM(2*d_model, d_model, 3)
    return p


if __name__ == "__main__":
    # PastAnalyser input: (batch=2, seq=5 [== Conv1d channels], features=20)
    # where features[:2] are integer team ids and features[2:] are 18 floats.
    B, T, D, V = 2, 5, 32, 16
    key = jax.random.PRNGKey(0)
    k_p, k_tok, k_feat = jax.random.split(key, 3)
    params = _init_params(k_p, d_model=D, vocab=V)

    ids = jax.random.randint(k_tok, (B, T, 2), 0, V).astype(jnp.float32)
    feats = jax.random.normal(k_feat, (B, T, 18), dtype=jnp.float32) * 0.5
    x = jnp.concatenate([ids, feats], axis=-1)                      # (2, 5, 20)

    out = past_analyser_forward(x, params)
    out = jax.block_until_ready(out)
    ref = reference_forward(x, params)
    assert out.shape == (B, D)
    assert jnp.allclose(out, ref, atol=2e-4, rtol=1e-3), "PastAnalyser mismatch vs reference"

    # Standalone check of the fused attention kernel (f32 end-to-end, exact softmax).
    tok = x[:, :, :2].astype(jnp.int32).reshape(B * T, 2)
    x1_ref = _attention_ref(tok, params["emb"], params["wq"], params["bq"],
                            params["wk"], params["bk"], params["wv"], params["bv"])
    x1 = teams_attention_forward(tok, params["emb"], params["wq"], params["bq"],
                                 params["wk"], params["bk"], params["wv"], params["bv"])
    assert jnp.allclose(x1, x1_ref, atol=1e-4, rtol=1e-3), "attention kernel mismatch"

    # Standalone check of the fused fc block (lane-dense output path).
    h_test = jax.random.normal(jax.random.PRNGKey(7), (B * T, 2 * D), jnp.float32)
    fc_out = fc_block_forward(h_test, params["fc_w1"], params["fc_b1"],
                              params["fc_w2"], params["fc_b2"])
    fc_ref = _fc_ref(h_test, params["fc_w1"], params["fc_b1"],
                     params["fc_w2"], params["fc_b2"])
    assert jnp.allclose(fc_out, fc_ref, atol=1e-4, rtol=1e-3), "fc block kernel mismatch"

    print("KERNEL_OK")
</pallas_src>

<mosaic_0001>
module attributes {stable_mosaic.version = 11 : i64} {
  func.func @teams_attention_kernel(%arg0: i32, %arg1: memref<16x2xi32, #tpu.memory_space<vmem>>, %arg2: memref<16x384xf32, #tpu.memory_space<vmem>>, %arg3: memref<1x384xf32, #tpu.memory_space<vmem>>, %arg4: memref<16x128xf32, #tpu.memory_space<vmem>>) attributes {dimension_semantics = [#tpu.dimension_semantics<arbitrary>], iteration_bounds = array<i64: 1>, scalar_prefetch = 0 : i64, scratch_operands = 0 : i64, tpu.core_type = #tpu.core_type<tc>, window_params = [{pipeline_mode = #tpu.pipeline_mode<synchronous>, transform_indices = @transform_0, window_bounds = array<i64: 16, 2>}, {pipeline_mode = #tpu.pipeline_mode<synchronous>, transform_indices = @transform_1, window_bounds = array<i64: 16, 384>}, {pipeline_mode = #tpu.pipeline_mode<synchronous>, transform_indices = @transform_2, window_bounds = array<i64: 1, 384>}, {pipeline_mode = #tpu.pipeline_mode<synchronous>, transform_indices = @transform_3, window_bounds = array<i64: 16, 128>}]} {
    %c0 = arith.constant 0 : index
    %c0_0 = arith.constant 0 : index
    %0 = vector.load %arg1[%c0, %c0_0] : memref<16x2xi32, #tpu.memory_space<vmem>>, vector<16x2xi32>
    %1 = tpu.iota {dimensions = array<i32: 1>} : vector<16x16xi32>
    %2 = vector.extract_strided_slice %0 {offsets = [0, 0], sizes = [16, 1], strides = [1, 1]} : vector<16x2xi32> to vector<16x1xi32>
    %3 = vector.broadcast %2 : vector<16x1xi32> to vector<16x16xi32>
    %4 = arith.cmpi eq, %3, %1 : vector<16x16xi32>
    %5 = arith.extui %4 : vector<16x16xi1> to vector<16x16xi32>
    %6 = arith.sitofp %5 : vector<16x16xi32> to vector<16x16xf32>
    %7 = vector.extract_strided_slice %0 {offsets = [0, 1], sizes = [16, 1], strides = [1, 1]} : vector<16x2xi32> to vector<16x1xi32>
    %8 = vector.broadcast %7 : vector<16x1xi32> to vector<16x16xi32>
    %9 = arith.cmpi eq, %8, %1 : vector<16x16xi32>
    %10 = arith.extui %9 : vector<16x16xi1> to vector<16x16xi32>
    %11 = arith.sitofp %10 : vector<16x16xi32> to vector<16x16xf32>
    %12 = tpu.concatenate %6, %11 in 0 : vector<16x16xf32>, vector<16x16xf32> -> vector<32x16xf32>
    %c0_1 = arith.constant 0 : index
    %c0_2 = arith.constant 0 : index
    %13 = vector.load %arg2[%c0_1, %c0_2] : memref<16x384xf32, #tpu.memory_space<vmem>>, vector<16x384xf32>
    %cst = arith.constant dense<0.000000e+00> : vector<32x384xf32>
    %14 = tpu.matmul %12, %13, %cst {dimension_numbers = #tpu.dot_dimension_numbers<[1], [0], [0], [1], [0, 0, 1, 1], [], []>} : vector<32x16xf32>, vector<16x384xf32>, vector<32x384xf32> -> vector<32x384xf32>
    %c0_3 = arith.constant 0 : index
    %c0_4 = arith.constant 0 : index
    %15 = vector.load %arg3[%c0_3, %c0_4] : memref<1x384xf32, #tpu.memory_space<vmem>>, vector<1x384xf32>
    %16 = vector.broadcast %15 : vector<1x384xf32> to vector<32x384xf32>
    %17 = arith.addf %14, %16 : vector<32x384xf32>
    %18 = vector.extract_strided_slice %17 {offsets = [0, 0], sizes = [16, 128], strides = [1, 1]} : vector<32x384xf32> to vector<16x128xf32>
    %19 = vector.extract_strided_slice %17 {offsets = [0, 128], sizes = [16, 128], strides = [1, 1]} : vector<32x384xf32> to vector<16x128xf32>
    %20 = vector.extract_strided_slice %17 {offsets = [0, 256], sizes = [16, 128], strides = [1, 1]} : vector<32x384xf32> to vector<16x128xf32>
    %21 = vector.extract_strided_slice %17 {offsets = [16, 0], sizes = [16, 128], strides = [1, 1]} : vector<32x384xf32> to vector<16x128xf32>
    %22 = vector.extract_strided_slice %17 {offsets = [16, 128], sizes = [16, 128], strides = [1, 1]} : vector<32x384xf32> to vector<16x128xf32>
    %23 = vector.extract_strided_slice %17 {offsets = [16, 256], sizes = [16, 128], strides = [1, 1]} : vector<32x384xf32> to vector<16x128xf32>
    %24 = arith.mulf %18, %19 : vector<16x128xf32>
    %25 = arith.mulf %18, %22 : vector<16x128xf32>
    %26 = arith.mulf %21, %19 : vector<16x128xf32>
    %27 = arith.mulf %21, %22 : vector<16x128xf32>
    %28 = tpu.concatenate %24, %25, %26, %27 in 0 : vector<16x128xf32>, vector<16x128xf32>, vector<16x128xf32>, vector<16x128xf32> -> vector<64x128xf32>
    %cst_5 = arith.constant dense<0.000000e+00> : vector<64xf32>
    %29 = vector.multi_reduction <add>, %28, %cst_5 [1] : vector<64x128xf32> to vector<64xf32>
    %30 = vector.shape_cast %29 : vector<64xf32> to vector<64x1xf32>
    %31 = vector.extract_strided_slice %30 {offsets = [0, 0], sizes = [16, 1], strides = [1, 1]} : vector<64x1xf32> to vector<16x1xf32>
    %32 = vector.extract_strided_slice %30 {offsets = [16, 0], sizes = [16, 1], strides = [1, 1]} : vector<64x1xf32> to vector<16x1xf32>
    %33 = vector.extract_strided_slice %30 {offsets = [32, 0], sizes = [16, 1], strides = [1, 1]} : vector<64x1xf32> to vector<16x1xf32>
    %34 = vector.extract_strided_slice %30 {offsets = [48, 0], sizes = [16, 1], strides = [1, 1]} : vector<64x1xf32> to vector<16x1xf32>
    %35 = arith.maximumf %31, %32 : vector<16x1xf32>
    %36 = arith.maximumf %33, %34 : vector<16x1xf32>
    %37 = tpu.concatenate %35, %35, %36, %36 in 0 : vector<16x1xf32>, vector<16x1xf32>, vector<16x1xf32>, vector<16x1xf32> -> vector<64x1xf32>
    %38 = arith.subf %30, %37 : vector<64x1xf32>
    %39 = math.exp %38 : vector<64x1xf32>
    %40 = vector.extract_strided_slice %39 {offsets = [0, 0], sizes = [16, 1], strides = [1, 1]} : vector<64x1xf32> to vector<16x1xf32>
    %41 = vector.extract_strided_slice %39 {offsets = [16, 0], sizes = [16, 1], strides = [1, 1]} : vector<64x1xf32> to vector<16x1xf32>
    %42 = vector.extract_strided_slice %39 {offsets = [32, 0], sizes = [16, 1], strides = [1, 1]} : vector<64x1xf32> to vector<16x1xf32>
    %43 = vector.extract_strided_slice %39 {offsets = [48, 0], sizes = [16, 1], strides = [1, 1]} : vector<64x1xf32> to vector<16x1xf32>
    %44 = arith.addf %40, %41 : vector<16x1xf32>
    %45 = arith.addf %42, %43 : vector<16x1xf32>
    %46 = arith.divf %40, %44 : vector<16x1xf32>
    %47 = arith.divf %41, %44 : vector<16x1xf32>
    %48 = arith.divf %42, %45 : vector<16x1xf32>
    %49 = arith.divf %43, %45 : vector<16x1xf32>
    %50 = arith.addf %46, %48 : vector<16x1xf32>
    %51 = arith.addf %47, %49 : vector<16x1xf32>
    %52 = vector.broadcast %50 : vector<16x1xf32> to vector<16x128xf32>
    %53 = arith.mulf %52, %20 : vector<16x128xf32>
    %54 = vector.broadcast %51 : vector<16x1xf32> to vector<16x128xf32>
    %55 = arith.mulf %54, %23 : vector<16x128xf32>
    %56 = arith.addf %53, %55 : vector<16x128xf32>
    %cst_6 = arith.constant 5.000000e-01 : f32
    %57 = vector.broadcast %cst_6 : f32 to vector<16x128xf32>
    %58 = arith.mulf %57, %56 : vector<16x128xf32>
    %c0_7 = arith.constant 0 : index
    %c0_8 = arith.constant 0 : index
    %59 = vector.load %arg4[%c0_7, %c0_8] : memref<16x128xf32, #tpu.memory_space<vmem>>, vector<16x128xf32>
    tpu.vector_store %arg4[%c0_7, %c0_8], %58 {strides = array<i32>} : memref<16x128xf32, #tpu.memory_space<vmem>>, vector<16x128xf32>,
    return
  }
  func.func @transform_0(%arg0: i32) -> (i32, i32) {
    %c0_i32 = arith.constant 0 : i32
    %c0_i32_0 = arith.constant 0 : i32
    %c0_i32_1 = arith.constant 0 : i32
    return %c0_i32, %c0_i32_0 : i32, i32
  }
  func.func @transform_1(%arg0: i32) -> (i32, i32) {
    %c0_i32 = arith.constant 0 : i32
    %c0_i32_0 = arith.constant 0 : i32
    %c0_i32_1 = arith.constant 0 : i32
    return %c0_i32, %c0_i32_0 : i32, i32
  }
  func.func @transform_2(%arg0: i32) -> (i32, i32) {
    %c0_i32 = arith.constant 0 : i32
    %c0_i32_0 = arith.constant 0 : i32
    %c0_i32_1 = arith.constant 0 : i32
    return %c0_i32, %c0_i32_0 : i32, i32
  }
  func.func @transform_3(%arg0: i32) -> (i32, i32) {
    %c0_i32 = arith.constant 0 : i32
    %c0_i32_0 = arith.constant 0 : i32
    %c0_i32_1 = arith.constant 0 : i32
    return %c0_i32, %c0_i32_0 : i32, i32
  }
}

</mosaic_0001>

<bundles_post_ra>
// kernel: tpu_custom_call.1
= control target key start
LH: loop header
LB: loop body
LE: loop exit
PB: predicated region body
PF: predicated region fallthrough
CT: control target
= control target key end

     0   :  { %8 = vsyncpa [#allocation3], 0  ;;  %s600_s0 = inlined_call_operand.vmem [shape: s32[16,2], index: 0, kind: input, shape index: {}]   ;;  %s601_s1 = inlined_call_operand.hbm [shape: f32[16,384], index: 1, kind: input, shape index: {}]   ;;  %s602_s2 = inlined_call_operand.vmem [shape: f32[1,384], index: 2, kind: input, shape index: {}]   ;;  %s603_s3 = inlined_call_operand.hbm [shape: f32[16,128], index: 3, kind: output, shape index: {}]  }
   0x1   :  { %9 = vsyncpa [#allocation4], 0  ;;  %s508_s12 = smov [#allocation2]   ;;  %s460_s16 = scalar_lea.hbm %s601_s1, 768 }
   0x2   :  { %s17_s13 = sshll.u32 %s508_s12, 4  ;;  %p461_p0 = scmp.ne.s32.totalorder %s601_s1, %s460_s16  ;;  %s18_s13 = int_to_ptr.vmem [resolvable:$true] %s17_s13 }
   0x3   :  { %p464_p1 = scmp.lt.u32.totalorder %s460_s16, %s601_s1 }
   0x5   :  { %p466_p2 = pnand %p464_p1, %p461_p0 }
   0x7   :  { %469 = shalt.err (!%p466_p2)
}
   0x8   :  { %s470_s21 = scalar_lea.vmem %s18_s13, 768  ;;  %p475_p4 = scmp.lt.s32.totalorder %s18_s13, %s18_s13 }
   0x9   :  { %p471_p3 = scmp.ne.s32.totalorder %s18_s13, %s470_s21  ;;  %p476_p5 = scmp.lt.s32.totalorder %s470_s21, %s470_s21 }
   0xb   :  { %p477_p6 = por %p476_p5, %p475_p4 }
   0xd   :  { %p478_p7 = pnand %p477_p6, %p471_p3 }
   0xf   :  { %481 = shalt.err (!%p478_p7)
}
  0x10   :  { %s509_s22 = smov 384   ;;  %s510_s23 = smov 24  }
  0x11   :  { %23 = dma.hbm_to_vmem [thread:$0]  %s601_s1, 768, %s18_s13, [#allocation3], %s509_s22, %s509_s22, %s510_s23  }
  0x12   :  { %504 = dma.done.wait [#allocation3], 768  }
  0x13   :  { %505 = vsyncadd [#allocation3], 4294966528  ;;  %v511_v0 = vmov 1   ;;  %v512_v1 = vmov 0   ;;  %v513_v2 = vmov 0.0   ;;  %v29_v3 = vld [vmem:[%s600_s0] sm:$0xff]  ;;  %v31_v14 = vlaneseq }
  0x14   :  { %434 = vset.pattern.permute.xlu1 %v511_v0  ;;  %433 = vset.pattern.permute.xlu0 %v512_v1  ;;  %v58_v4 = vld [vmem:[#allocation2 + $0x8] sm:$0xff]  ;;  %v61_v5 = vld [vmem:[#allocation2 + $0x20] sm:$0xff]  ;;  %v60_v7 = vld [vmem:[#allocation2 + $0x18] sm:$0xff]  ;;  %vm80_vm0 = vcmask 130048  }
  0x15   :  { %157 = vmatprep.mubr.f32.mxu0 %v513_v2  ;;  %175 = vmatprep.mubr.f32.mxu1 %v513_v2  ;;  %v57_v6 = vld [vmem:[#allocation2] sm:$0xff]  ;;  %v30_v8 = vld [vmem:[%s600_s0 + $0x8] sm:$0xff]  ;;  %v414_v9 = vpack.c.bf16 %v61_v5, %v58_v4  ;;  %v62_v12 = vld [vmem:[#allocation2 + $0x28] sm:$0xff]  ;;  %v32_v15 = vand.u32 127, %v31_v14  ;;  %v563_v24 = vshrl.u32 %v31_v14, 7 }
  0x16   :  { %46 = vperm.xlu1 %434, %v29_v3   ;;  %34 = vperm.xlu0 %433, %v29_v3   ;;  %v416_v10 = vpack.c.bf16 %v60_v7, %v57_v6  ;;  %v59_v11 = vld [vmem:[#allocation2 + $0x10] sm:$0xff]  ;;  %v569_v26 = vld [vmem:[%s602_s2] sm:$0x7]  ;;  %s514_s2 = smov [#allocation5]  }
  0x17   :  { %415 = vmatprep.subr.bf16.mxu0 %v414_v9  ;;  %422 = vmatprep.subr.bf16.mxu1 %v414_v9  ;;  %v418_v13 = vpack.c.bf16 %v62_v12, %v59_v11  ;;  %v67_v25 = vsub.s32 0, %v563_v24  ;;  %v71_v27 = vsub.s32 1, %v563_v24  ;;  %s374_s30 = sshll.u32 %s514_s2, 4  ;;  %s375_s30 = int_to_ptr.vmem [resolvable:$true] %s374_s30 }
  0x18   :  { %417 = vmatpush1.bf16.msra.mxu0 %v416_v10  ;;  %423 = vmatpush1.bf16.msra.mxu1 %v416_v10  ;;  %s482_s4 = scalar_lea.vmem %s375_s30, 256  ;;  %p487_p9 = scmp.lt.s32.totalorder %s375_s30, %s375_s30 }
  0x19   :  { %419 = vmatprep.subr.bf16.mxu1 %v418_v13  ;;  %v68_v28 = vrot.slane %v569_v26, %v67_v25  ;;  %v72_v29 = vrot.slane %v569_v26, %v71_v27  ;;  %p483_p8 = scmp.ne.s32.totalorder %s375_s30, %s482_s4  ;;  %p488_p10 = scmp.lt.s32.totalorder %s482_s4, %s482_s4 }
  0x1a   :  { %49 = vperm.xlu1 %434, %v30_v8   ;;  %37 = vperm.xlu0 %433, %v30_v8  }
  0x1b   :  { %p489_p11 = por %p488_p10, %p487_p9 }
  0x1d   :  { %p490_p12 = pnand %p489_p11, %p483_p8 }
  0x1e   :  { %435 = vset.pattern.permute.xlu1 %v512_v1 }
  0x95   :  { %v47_v16 = vpop.permute.xlu1 %46  ;;  %v35_v17 = vpop.permute.xlu0 %34 }
  0x96   :  { %vm39_vm1 = vcmp.eq.s32.totalorder %v35_v17, %v32_v15  ;;  %vm51_vm4 = vcmp.eq.s32.totalorder %v47_v16, %v32_v15 }
  0x97   :  { %v386_v18 = vsel %vm39_vm1, 1.0, %v513_v2  ;;  %v388_v23 = vsel %vm51_vm4, 1.0, %v513_v2 }
  0x98   :  { %390 = vmatmul.mubr.msk.f32.vlgmr.msra.gmra.mrb[0].mxu0 %vm80_vm0, %v386_v18 }
  0x99   :  { %v50_v19 = vpop.permute.xlu1 %49  ;;  %v38_v20 = vpop.permute.xlu0 %37  ;;  %163 = vmatprep.mubr.f32.mxu0 %v513_v2 }
  0x9a   :  { %vm52_vm2 = vcmp.eq.s32.totalorder %v50_v19, %v32_v15  ;;  %vm40_vm3 = vcmp.eq.s32.totalorder %v38_v20, %v32_v15 }
  0x9b   :  { %v389_v21 = vsel %vm52_vm2, 1.0, %v513_v2  ;;  %v387_v22 = vsel %vm40_vm3, 1.0, %v513_v2 }
  0x9c   :  { %391 = vmatmul.mubr.msk.f32.gmra.mrb[2].mxu0 %vm80_vm0, %v387_v22  ;;  %393 = vmatmul.mubr.msk.f32.vlgmr.msra.gmra.mrb[0].mxu1 %vm80_vm0, %v389_v21 }
  0x9d   :  { %421 = vmatpush3.bf16.msra.mxu1 %v418_v13  ;;  %408 = vmatprep.mubr.msk.f32.mxu1 %vm80_vm0, %v386_v18 }
  0x9e   :  { %169 = vmatprep.mubr.f32.mxu0 %v513_v2 }
  0xa0   :  { %392 = vmatmul.mubr.msk.f32.gmra.mrb[4].mxu0 %vm80_vm0, %v388_v23  ;;  %409 = vmatmul.mubr.msk.f32.vlgmr.msra.gmra.mrb[2].mxu1 %vm80_vm0, %v387_v22 }
  0xa1   :  { %411 = vmatprep.mubr.msk.f32.mxu1 %vm80_vm0, %v388_v23 }
  0xa4   :  { %412 = vmatmul.mubr.msk.f32.gmra.mrb[4].mxu1 %vm80_vm0, %v389_v21 }
 0x16b   :  { %v159_v30 = vpop.f32.mrb[0].mxu0 }
 0x16c   :  { %v160_v31 = vadd.f32 %v159_v30, %v68_v28  ;;  %v161_v32 = vpop.f32.mrb[1].mxu0 }
 0x16d   :  { %v162_v33 = vadd.f32 %v161_v32, %v72_v29 }
 0x16f   :  { %v165_v34 = vpop.f32.mrb[2].mxu0  ;;  %v177_v35 = vpop.f32.mrb[0].mxu1  ;;  %v267_v36 = vmul.f32 %v162_v33, %v160_v31 }
 0x170   :  { %v166_v37 = vadd.f32 %v165_v34, %v68_v28  ;;  %v178_v38 = vadd.f32 %v177_v35, %v68_v28  ;;  %v167_v39 = vpop.f32.mrb[3].mxu0  ;;  %v179_v40 = vpop.f32.mrb[1].mxu1 }
 0x171   :  { %v168_v41 = vadd.f32 %v167_v39, %v72_v29  ;;  %v180_v42 = vadd.f32 %v179_v40, %v72_v29  ;;  %275 = vadd.xlane.f32.xlu0 %v267_v36 }
 0x173   :  { %v171_v43 = vpop.f32.mrb[4].mxu0  ;;  %v574_v44 = vpop.f32.mrb[2].mxu1  ;;  %v270_v45 = vmul.f32 %v180_v42, %v166_v37  ;;  %v268_v46 = vmul.f32 %v168_v41, %v166_v37  ;;  %v272_v47 = vmul.f32 %v178_v38, %v168_v41  ;;  %v274_v48 = vmul.f32 %v180_v42, %v178_v38 }
 0x174   :  { %v172_v49 = vadd.f32 %v171_v43, %v68_v28  ;;  %v173_v50 = vpop.f32.mrb[5].mxu0  ;;  %v576_v51 = vpop.f32.mrb[3].mxu1 }
 0x175   :  { %v174_v52 = vadd.f32 %v173_v50, %v72_v29  ;;  %281 = vadd.xlane.f32.xlu0 %v270_v45  ;;  %277 = vadd.xlane.f32.xlu1 %v268_v46 }
 0x176   :  { %v271_v53 = vmul.f32 %v172_v49, %v162_v33 }
 0x177   :  { %v578_v54 = vpop.f32.mrb[4].mxu1  ;;  %v269_v55 = vmul.f32 %v174_v52, %v160_v31  ;;  %v273_v56 = vmul.f32 %v174_v52, %v172_v49 }
 0x178   :  { %v580_v57 = vpop.f32.mrb[5].mxu1 }
 0x179   :  { %285 = vadd.xlane.f32.xlu0 %v272_v47  ;;  %283 = vadd.xlane.f32.xlu1 %v271_v53 }
 0x17d   :  { %279 = vadd.xlane.f32.xlu0 %v269_v55  ;;  %287 = vadd.xlane.f32.xlu1 %v273_v56  ;;  %v75_v55 = vsub.s32 2, %v563_v24 }
 0x17f   :  { %v76_v56 = vrot.slane %v569_v26, %v75_v55 }
 0x181   :  { %289 = vadd.xlane.f32.xlu0 %v274_v48 }
 0x1fe   :  { %v276_v58 = vpop.xlane.xlu0 %275 }
 0x202   :  { %v278_v59 = vpop.xlane.xlu1 %277  ;;  %v282_v60 = vpop.xlane.xlu0 %281 }
 0x203   :  { %v292_v61 = vmax.f32 %v278_v59, %v282_v60 }
 0x205   :  { %v296_v62 = vsub.f32 %v278_v59, %v292_v61  ;;  %v298_v63 = vsub.f32 %v282_v60, %v292_v61  ;;  %v249_v59 = vadd.f32 %v576_v51, %v76_v56  ;;  %v259_v60 = vadd.f32 %v580_v57, %v76_v56 }
 0x206   :  { %v284_v0 = vpop.xlane.xlu1 %283  ;;  %v286_v1 = vpop.xlane.xlu0 %285 }
 0x207   :  { %v305_v2 = vmul.f32 1.442695, %v296_v62  ;;  %v309_v3 = vmul.f32 1.442695, %v298_v63 }
 0x209   :  { %436 = vpow2.f32 %v305_v2  ;;  %v264_v2 = vadd.f32 %v578_v54, %v76_v56 }
 0x20a   :  { %v288_v4 = vpop.xlane.xlu1 %287  ;;  %v280_v5 = vpop.xlane.xlu0 %279  ;;  %438 = vpow2.f32 %v309_v3 }
 0x20b   :  { %v293_v6 = vmax.f32 %v284_v0, %v288_v4  ;;  %v291_v7 = vmax.f32 %v276_v58, %v280_v5 }
 0x20d   :  { %v299_v8 = vsub.f32 %v284_v0, %v293_v6  ;;  %v301_v9 = vsub.f32 %v288_v4, %v293_v6  ;;  %v295_v10 = vsub.f32 %v276_v58, %v291_v7  ;;  %v297_v11 = vsub.f32 %v280_v5, %v291_v7 }
 0x20e   :  { %v290_v12 = vpop.xlane.xlu0 %289 }
 0x20f   :  { %v311_v13 = vmul.f32 1.442695, %v299_v8  ;;  %v315_v14 = vmul.f32 1.442695, %v301_v9  ;;  %v303_v15 = vmul.f32 1.442695, %v295_v10  ;;  %v294_v16 = vmax.f32 %v286_v1, %v290_v12 }
 0x210   :  { %v307_v17 = vmul.f32 1.442695, %v297_v11 }
 0x211   :  { %440 = vpow2.f32 %v311_v13  ;;  %v300_v18 = vsub.f32 %v286_v1, %v294_v16  ;;  %v302_v19 = vsub.f32 %v290_v12, %v294_v16  ;;  %v254_v1 = vadd.f32 %v574_v44, %v76_v56 }
 0x212   :  { %442 = vpow2.f32 %v315_v14 }
 0x213   :  { %444 = vpow2.f32 %v303_v15  ;;  %v313_v20 = vmul.f32 1.442695, %v300_v18  ;;  %v317_v21 = vmul.f32 1.442695, %v302_v19  ;;  %v437_v22 = vpop.eup %436 }
 0x214   :  { %446 = vpow2.f32 %v307_v17  ;;  %v439_v23 = vpop.eup %438 }
 0x215   :  { %448 = vpow2.f32 %v313_v20  ;;  %v320_v28 = vadd.f32 %v439_v23, %v437_v22 }
 0x216   :  { %450 = vpow2.f32 %v317_v21 }
 0x21b   :  { %v441_v25 = vpop.eup %440 }
 0x21c   :  { %v443_v27 = vpop.eup %442 }
 0x21d   :  { %v445_v29 = vpop.eup %444  ;;  %v321_v30 = vadd.f32 %v443_v27, %v441_v25 }
 0x21e   :  { %v447_v31 = vpop.eup %446 }
 0x21f   :  { %v449_v32 = vpop.eup %448  ;;  %452 = vrcp.f32 %v321_v30  ;;  %v319_v33 = vadd.f32 %v447_v31, %v445_v29 }
 0x220   :  { %v451_v34 = vpop.eup %450  ;;  %454 = vrcp.f32 %v320_v28 }
 0x221   :  { %456 = vrcp.f32 %v319_v33  ;;  %v322_v35 = vadd.f32 %v451_v34, %v449_v32 }
 0x223   :  { %458 = vrcp.f32 %v322_v35 }
 0x229   :  { %v453_v36 = vpop.eup %452 }
 0x22a   :  { %v455_v37 = vpop.eup %454  ;;  %v330_v38 = vmul.f32 %v453_v36, %v441_v25  ;;  %v333_v46 = vmul.f32 %v453_v36, %v443_v27 }
 0x22b   :  { %v457_v39 = vpop.eup %456  ;;  %v326_v42 = vmul.f32 %v455_v37, %v437_v22  ;;  %v328_v52 = vmul.f32 %v455_v37, %v439_v23 }
 0x22c   :  { %v324_v40 = vmul.f32 %v457_v39, %v445_v29  ;;  %v327_v45 = vmul.f32 %v457_v39, %v447_v31 }
 0x22d   :  { %v459_v41 = vpop.eup %458 }
 0x22e   :  { %v335_v43 = vadd.f32 %v330_v38, %v324_v40  ;;  %v332_v47 = vmul.f32 %v459_v41, %v449_v32  ;;  %v337_v49 = vadd.f32 %v333_v46, %v327_v45  ;;  %v334_v50 = vmul.f32 %v459_v41, %v451_v34 }
 0x230   :  { %341 = vperm.xlu1 %435, %v335_v43   ;;  %v336_v48 = vadd.f32 %v332_v47, %v326_v42  ;;  %v338_v53 = vadd.f32 %v334_v50, %v328_v52 }
 0x232   :  { %346 = vperm.xlu0 %433, %v336_v48  }
 0x234   :  { %353 = vperm.xlu1 %435, %v337_v49  }
 0x238   :  { %358 = vperm.xlu1 %435, %v338_v53  }
 0x2af   :  { %v342_v58 = vpop.permute.xlu1 %341 }
 0x2b0   :  { %v349_v62 = vmul.f32 %v342_v58, %v249_v59 }
 0x2b1   :  { %v347_v0 = vpop.permute.xlu0 %346 }
 0x2b2   :  { %v350_v6 = vmul.f32 %v347_v0, %v254_v1 }
 0x2b3   :  { %v354_v61 = vpop.permute.xlu1 %353 }
 0x2b4   :  { %v361_v63 = vmul.f32 %v354_v61, %v259_v60 }
 0x2b6   :  { %v363_v3 = vadd.f32 %v361_v63, %v349_v62 }
 0x2b7   :  { %v359_v4 = vpop.permute.xlu1 %358 }
 0x2b8   :  { %v365_v5 = vmul.f32 0.5, %v363_v3  ;;  %v362_v24 = vmul.f32 %v359_v4, %v264_v2 }
 0x2ba   :  { %367 = vst [vmem:[#allocation5] sm:$0xff] %v365_v5  ;;  %v364_v26 = vadd.f32 %v362_v24, %v350_v6 }
 0x2bc   :  { %v366_v51 = vmul.f32 0.5, %v364_v26 }
 0x2be   :  { %368 = vst [vmem:[#allocation5 + $0x8] sm:$0xff] %v366_v51 }
 0x2bf   :  { %493 = shalt.err (!%p490_p12)
}
 0x2c0   :  { %s494_s7 = scalar_lea.hbm %s603_s3, 256 }
 0x2c1   :  { %p495_p13 = scmp.ne.s32.totalorder %s603_s3, %s494_s7  ;;  %p498_p0 = scmp.lt.u32.totalorder %s494_s7, %s603_s3 }
 0x2c3   :  { %p500_p1 = pnand %p498_p0, %p495_p13 }
 0x2c5   :  { %503 = shalt.err (!%p500_p1)
}
 0x2c6   :  { %s515_s12 = smov 128   ;;  %s516_s13 = smov 8  }
 0x2c7   :  { %380 = dma.vmem_to_hbm [thread:$0]  %s375_s30, 256, %s603_s3, [#allocation4], %s515_s12, %s515_s12, %s516_s13  }
 0x2c8   :  { %506 = dma.done.wait [#allocation4], 256  }
 0x2c9   :  { %507 = vsyncadd [#allocation4], 4294967040 }
 0x2ca   :  { %384 = vsyncpa [#allocation3], 1 }
 0x2cb   :  { %385 = vsyncpa [#allocation4], 1 }

</bundles_post_ra>
